<compile_context>
chip_gen: v7x
topology: tpu7x:2x2x1
jax: 0.10.0
libtpu: 0.0.40
codegen_flags: <defaults>
</compile_context>

<pallas_src>
import functools

import jax
import jax.numpy as jnp
from jax import lax
from jax.experimental import pallas as pl
from jax.experimental.pallas import tpu as pltpu

ALPHA = 1.0
GAMMA = 0.5
OHEM_PERCENT = 0.25

_LANE = 128


def _cdiv(a, b):
    return -(-a // b)


# ---------------------------------------------------------------------------
# Kernel 1: fused element-wise focal-loss terms + Lovasz hinge errors
# ---------------------------------------------------------------------------
def _elementwise_kernel(pred_ref, tgt_ref, focal_ref, err_ref):
    x = pred_ref[...]                         # (rt, 128) f32 logits
    t = tgt_ref[...].astype(jnp.float32)      # (rt, 128) bf16 {0,1} labels -> f32

    # ignore_index=None (module default): valid_mask == 1 everywhere and folds away.
    # TODO(synk): non-None ignore_index needs masking here plus a valid-pixel
    #             compaction for the Lovasz branch; not implemented.
    signs = 2.0 * t - 1.0
    z = x * signs

    # Stable BCE-with-logits: x - x*t + max(-x,0) + log(exp(-max)+exp(-x-max))
    # rewritten as relu(x) - x*t + log1p(exp(-|x|)).
    bce = jnp.maximum(x, 0.0) - x * t + jnp.log1p(jnp.exp(-jnp.abs(x)))

    # Focal weight alpha * exp(gamma * logsigmoid(-z)); for the module defaults
    # (alpha=1, gamma=0.5) this is exactly rsqrt(1 + exp(z)) — fewer EUP ops.
    if ALPHA == 1.0 and GAMMA == 0.5:
        w = lax.rsqrt(1.0 + jnp.exp(z))
    else:
        invprobs = jnp.minimum(-z, 0.0) - jnp.log1p(jnp.exp(-jnp.abs(z)))
        w = ALPHA * jnp.exp(GAMMA * invprobs)

    focal_ref[...] = w * bce
    # Lovasz hinge errors: 1 - logits*signs.  The symmetric call
    # lovasz_hinge(-preds, 1-target) yields the SAME errors, so one tensor
    # serves both halves (only gt vs 1-gt differ downstream).
    err_ref[...] = 1.0 - z


def _elementwise_call(x2, t2, row_tile):
    rows = x2.shape[0]
    spec = pl.BlockSpec((row_tile, _LANE), lambda i: (i, 0))
    return pl.pallas_call(
        _elementwise_kernel,
        out_shape=(jax.ShapeDtypeStruct((rows, _LANE), jnp.float32),
                   jax.ShapeDtypeStruct((rows, _LANE), jnp.float32)),
        grid=(rows // row_tile,),
        in_specs=[spec, spec],
        out_specs=(spec, spec),
        compiler_params=pltpu.CompilerParams(
            dimension_semantics=("parallel",)),   # shard row tiles across TCs
    )(x2, t2)


# ---------------------------------------------------------------------------
# Kernel 2: streaming symmetric Lovasz gradient + dot reduction
# ---------------------------------------------------------------------------
def _lovasz_kernel(err_ref, gt_ref, gts_ref, out_ref,
                   tri_ref, carry_ref, prev_ref, acc_ref,
                   *, tn, sub_chunks, total_pixels):
    ci = pl.program_id(1)          # chunk index along the sorted pixel axis

    @pl.when(ci == 0)              # (re-)init at the start of every batch block
    def _init():
        # Local cumsum operator: tri[r, c] = 1 iff r <= c.  Built once into VMEM
        # scratch (never shipped from HBM); bf16 is lossless for {0,1}.
        row = lax.broadcasted_iota(jnp.int32, (tn, tn), 0)
        col = lax.broadcasted_iota(jnp.int32, (tn, tn), 1)
        tri_ref[...] = (row <= col).astype(jnp.bfloat16)
        carry_ref[...] = jnp.zeros_like(carry_ref)
        prev_ref[...] = jnp.zeros_like(prev_ref)
        acc_ref[...] = jnp.zeros_like(acc_ref)

    gts = gts_ref[...]                                  # (bt, 1) per-image positives
    gts_n = jnp.float32(total_pixels) - gts
    base = ci * (sub_chunks * tn)

    def body(s, carry):
        off = pl.multiple_of(s * tn, 128)
        e = err_ref[:, pl.ds(off, tn)]                  # (bt, tn) f32, sorted desc
        g = gt_ref[:, pl.ds(off, tn)]                   # (bt, tn) bf16 {0,1}
        relu_e = jnp.maximum(e, 0.0)

        # Single local cumsum (bf16 MXU matmul, f32 accumulate) + running carry.
        local_cs = jnp.dot(g, tri_ref[...], preferred_element_type=jnp.float32)
        cs_g = carry_ref[...] + local_cs                # cumsum(gt)
        col_i = lax.broadcasted_iota(jnp.int32, e.shape, 1)
        # TODO(synk): the f32 position counter / carry are exact only for P < 2^24.
        count = (col_i + 1 + base + off).astype(jnp.float32)
        cs_ng = count - cs_g                            # cumsum(1 - gt)

        # Both halves of the symmetric loss from the single cumsum.
        jac_p = 1.0 - (gts - cs_g) / (gts + cs_ng)
        jac_n = 1.0 - (gts_n - cs_ng) / (gts_n + cs_g)
        jsum = jac_p + jac_n

        # First difference across the whole (chunked) sequence; prev_ref carries
        # the previous sub-chunk's last value (0 before the very first element).
        shifted = pltpu.roll(jsum, shift=1, axis=1)
        jprev = jnp.where(col_i == 0, prev_ref[...], shifted)
        grad_sum = jsum - jprev

        acc_ref[...] += 0.5 * jnp.sum(relu_e * grad_sum, axis=-1, keepdims=True)
        carry_ref[...] += jnp.sum(g.astype(jnp.float32), axis=-1, keepdims=True)
        prev_ref[...] = jsum[:, tn - 1:tn]
        return carry

    lax.fori_loop(0, sub_chunks, body, 0, unroll=True)

    @pl.when(ci == pl.num_programs(1) - 1)
    def _finalize():
        # Lane-dense (bt, 128) slab (all lanes identical) -> unmasked stores.
        out_ref[...] = jnp.broadcast_to(acc_ref[...], out_ref.shape)


def _lovasz_tiles(P, B):
    p128 = _cdiv(P, 128) * 128
    tn = min(512, p128)                    # cumsum tile; tri scratch <= 512 KiB bf16
    # Aim for >= ~128-256 KiB of f32 errors per sequential grid step (amortize
    # ~0.35us/step + tiny-DMA overhead); cap the unrolled inner loop at 32 steps.
    target = max(tn, (256 * 1024) // (4 * max(B, 1)))
    sub = max(1, min(32, target // tn, max(1, p128 // tn)))
    chunk = sub * tn
    return tn, sub, chunk, _cdiv(P, chunk) * chunk


def _lovasz_call(errors_sorted, gt_sorted, gts, *, tn, sub, real_p):
    B, p_pad = errors_sorted.shape
    chunk = sub * tn
    # Split the batch across TensorCores (v7x megacore) when it stays sublane /
    # bf16-packing aligned; harmless no-op on 1-TC chips and small batches.
    b_tile = B // 2 if (B % 32 == 0) else B
    kernel = functools.partial(_lovasz_kernel, tn=tn, sub_chunks=sub,
                               total_pixels=float(real_p))
    chunk_spec = pl.BlockSpec((b_tile, chunk), lambda bi, ci: (bi, ci))
    return pl.pallas_call(
        kernel,
        out_shape=jax.ShapeDtypeStruct((B, _LANE), jnp.float32),
        grid=(B // b_tile, p_pad // chunk),
        in_specs=[chunk_spec, chunk_spec,
                  pl.BlockSpec((b_tile, 1), lambda bi, ci: (bi, 0))],
        out_specs=pl.BlockSpec((b_tile, _LANE), lambda bi, ci: (bi, 0)),
        scratch_shapes=[pltpu.VMEM((tn, tn), jnp.bfloat16),    # tri cumsum operator
                        pltpu.VMEM((b_tile, 1), jnp.float32),  # carry: sum(gt) so far
                        pltpu.VMEM((b_tile, 1), jnp.float32),  # prev jaccard-sum value
                        pltpu.VMEM((b_tile, 1), jnp.float32)], # loss accumulator
        compiler_params=pltpu.CompilerParams(
            dimension_semantics=("parallel", "arbitrary")),    # batch ||, chunk scan
    )(errors_sorted, gt_sorted, gts)


# ---------------------------------------------------------------------------
# CombineLoss forward (ignore_index=None, the module default)
# ---------------------------------------------------------------------------
@jax.jit
def combine_loss(preds, target):
    B = preds.shape[0]
    P = preds.size // B
    N = B * P

    # ---- fused element-wise pass on a lane/sublane-dense (rows, 128) layout ----
    preds_flat = preds.reshape(-1).astype(jnp.float32)
    target_flat = target.reshape(-1).astype(jnp.bfloat16)     # {0,1} exact in bf16
    r_raw = _cdiv(N, _LANE)
    row_tile = min(1024, max(8, pl.next_power_of_2(r_raw)))   # <= ~0.5 MiB f32 block
    rows = _cdiv(r_raw, row_tile) * row_tile
    n_pad = rows * _LANE
    if n_pad > N:
        preds_flat = jnp.pad(preds_flat, (0, n_pad - N))
        target_flat = jnp.pad(target_flat, (0, n_pad - N))
    focal2, err2 = _elementwise_call(preds_flat.reshape(rows, _LANE),
                                     target_flat.reshape(rows, _LANE), row_tile)
    focal_flat = focal2.reshape(-1)[:N]
    errors = err2.reshape(-1)[:N].reshape(B, P)

    # ---- focal loss with OHEM (top-k over the whole flattened batch) ----
    k = max(int(OHEM_PERCENT * N), 1)   # guard k == 0 -> NaN mean
    # TODO(synk): top-k (data-dependent selection) has no clean Pallas TPU
    #             equivalent; done with lax.top_k in JAX.
    ohem = lax.top_k(focal_flat, k)[0]
    focal_loss = jnp.mean(ohem)

    # ---- symmetric Lovasz hinge (per image, then mean over batch) ----
    target_bf = target.reshape(B, P).astype(jnp.bfloat16)
    gts = jnp.sum(target_bf.astype(jnp.float32), axis=-1, keepdims=True)
    # TODO(synk): the descending sort is data-dependent; done with a single
    #             key+payload lax.sort, the kernel consumes pre-sorted data.
    neg_sorted, gt_sorted = lax.sort((-errors, target_bf), dimension=-1, num_keys=1)
    errors_sorted = -neg_sorted

    tn, sub, chunk, p_pad = _lovasz_tiles(P, B)
    if p_pad > P:
        # Padded pixels sit after the real (sorted) pixels with error 0
        # (relu -> 0 contribution) and label 0, so real cumsums are untouched.
        errors_sorted = jnp.pad(errors_sorted, ((0, 0), (0, p_pad - P)))
        gt_sorted = jnp.pad(gt_sorted, ((0, 0), (0, p_pad - P)))

    sym = _lovasz_call(errors_sorted, gt_sorted, gts, tn=tn, sub=sub, real_p=P)
    lovasz_loss = jnp.mean(sym[:, 0])      # (B, 128) slab, lanes identical

    return lovasz_loss + focal_loss


if __name__ == "__main__":
    key = jax.random.PRNGKey(0)
    k1, k2 = jax.random.split(key)
    B, H, W = 2, 16, 16
    preds = jax.random.normal(k1, (B, H, W), dtype=jnp.float32)             # logits
    target = jax.random.bernoulli(k2, 0.5, (B, H, W)).astype(jnp.float32)   # {0,1}

    out = combine_loss(preds, target)
    out = jax.block_until_ready(out)
    assert out.shape == () and bool(jnp.isfinite(out))
    print("KERNEL_OK")
</pallas_src>

<mosaic_0001>
module attributes {stable_mosaic.version = 11 : i64} {
  func.func @_elementwise_kernel(%arg0: i32, %arg1: memref<8x128xf32, #tpu.memory_space<vmem>>, %arg2: memref<8x128xbf16, #tpu.memory_space<vmem>>, %arg3: memref<8x128xf32, #tpu.memory_space<vmem>>, %arg4: memref<8x128xf32, #tpu.memory_space<vmem>>) attributes {dimension_semantics = [#tpu.dimension_semantics<parallel>], iteration_bounds = array<i64: 1>, scalar_prefetch = 0 : i64, scratch_operands = 0 : i64, tpu.core_type = #tpu.core_type<tc>, window_params = [{transform_indices = @transform_0, window_bounds = array<i64: 8, 128>}, {transform_indices = @transform_1, window_bounds = array<i64: 8, 128>}, {transform_indices = @transform_2, window_bounds = array<i64: 8, 128>}, {transform_indices = @transform_3, window_bounds = array<i64: 8, 128>}]} {
    %c0 = arith.constant 0 : index
    %c0_0 = arith.constant 0 : index
    %0 = vector.load %arg1[%c0, %c0_0] : memref<8x128xf32, #tpu.memory_space<vmem>>, vector<8x128xf32>
    %c0_1 = arith.constant 0 : index
    %c0_2 = arith.constant 0 : index
    %1 = vector.load %arg2[%c0_1, %c0_2] : memref<8x128xbf16, #tpu.memory_space<vmem>>, vector<8x128xbf16>
    %2 = arith.extf %1 : vector<8x128xbf16> to vector<8x128xf32>
    %cst = arith.constant 2.000000e+00 : f32
    %3 = vector.broadcast %cst : f32 to vector<8x128xf32>
    %4 = arith.mulf %3, %2 : vector<8x128xf32>
    %cst_3 = arith.constant 1.000000e+00 : f32
    %5 = vector.broadcast %cst_3 : f32 to vector<8x128xf32>
    %6 = arith.subf %4, %5 : vector<8x128xf32>
    %7 = arith.mulf %0, %6 : vector<8x128xf32>
    %cst_4 = arith.constant 0.000000e+00 : f32
    %8 = vector.broadcast %cst_4 : f32 to vector<8x128xf32>
    %9 = arith.maximumf %0, %8 : vector<8x128xf32>
    %10 = arith.mulf %0, %2 : vector<8x128xf32>
    %11 = arith.subf %9, %10 : vector<8x128xf32>
    %12 = math.absf %0 : vector<8x128xf32>
    %cst_5 = arith.constant 0.000000e+00 : f32
    %13 = vector.broadcast %cst_5 : f32 to vector<8x128xf32>
    %14 = arith.subf %13, %12 : vector<8x128xf32>
    %15 = math.exp %14 : vector<8x128xf32>
    %16 = math.log1p %15 : vector<8x128xf32>
    %17 = arith.addf %11, %16 : vector<8x128xf32>
    %18 = math.exp %7 : vector<8x128xf32>
    %cst_6 = arith.constant 1.000000e+00 : f32
    %19 = vector.broadcast %cst_6 : f32 to vector<8x128xf32>
    %20 = arith.addf %19, %18 : vector<8x128xf32>
    %21 = math.rsqrt %20 : vector<8x128xf32>
    %22 = arith.mulf %21, %17 : vector<8x128xf32>
    %c0_7 = arith.constant 0 : index
    %c0_8 = arith.constant 0 : index
    %23 = vector.load %arg3[%c0_7, %c0_8] : memref<8x128xf32, #tpu.memory_space<vmem>>, vector<8x128xf32>
    tpu.vector_store %arg3[%c0_7, %c0_8], %22 {strides = array<i32>} : memref<8x128xf32, #tpu.memory_space<vmem>>, vector<8x128xf32>,
    %cst_9 = arith.constant 1.000000e+00 : f32
    %24 = vector.broadcast %cst_9 : f32 to vector<8x128xf32>
    %25 = arith.subf %24, %7 : vector<8x128xf32>
    %c0_10 = arith.constant 0 : index
    %c0_11 = arith.constant 0 : index
    %26 = vector.load %arg4[%c0_10, %c0_11] : memref<8x128xf32, #tpu.memory_space<vmem>>, vector<8x128xf32>
    tpu.vector_store %arg4[%c0_10, %c0_11], %25 {strides = array<i32>} : memref<8x128xf32, #tpu.memory_space<vmem>>, vector<8x128xf32>,
    return
  }
  func.func @transform_0(%arg0: i32) -> (i32, i32) {
    %c0_i32 = arith.constant 0 : i32
    %c0_i32_0 = arith.constant 0 : i32
    return %arg0, %c0_i32 : i32, i32
  }
  func.func @transform_1(%arg0: i32) -> (i32, i32) {
    %c0_i32 = arith.constant 0 : i32
    %c0_i32_0 = arith.constant 0 : i32
    return %arg0, %c0_i32 : i32, i32
  }
  func.func @transform_2(%arg0: i32) -> (i32, i32) {
    %c0_i32 = arith.constant 0 : i32
    %c0_i32_0 = arith.constant 0 : i32
    return %arg0, %c0_i32 : i32, i32
  }
  func.func @transform_3(%arg0: i32) -> (i32, i32) {
    %c0_i32 = arith.constant 0 : i32
    %c0_i32_0 = arith.constant 0 : i32
    return %arg0, %c0_i32 : i32, i32
  }
}

module attributes {stable_mosaic.version = 11 : i64} {
  func.func @_lovasz_kernel(%arg0: i32, %arg1: i32, %arg2: memref<2x256xf32, #tpu.memory_space<vmem>>, %arg3: memref<2x256xbf16, #tpu.memory_space<vmem>>, %arg4: memref<2x1xf32, #tpu.memory_space<vmem>>, %arg5: memref<2x128xf32, #tpu.memory_space<vmem>>, %arg6: memref<256x256xbf16, #tpu.memory_space<vmem>>, %arg7: memref<2x1xf32, #tpu.memory_space<vmem>>, %arg8: memref<2x1xf32, #tpu.memory_space<vmem>>, %arg9: memref<2x1xf32, #tpu.memory_space<vmem>>) attributes {dimension_semantics = [#tpu.dimension_semantics<parallel>, #tpu.dimension_semantics<arbitrary>], iteration_bounds = array<i64: 1, 1>, scalar_prefetch = 0 : i64, scratch_operands = 4 : i64, tpu.core_type = #tpu.core_type<tc>, window_params = [{transform_indices = @transform_0, window_bounds = array<i64: 2, 256>}, {transform_indices = @transform_1, window_bounds = array<i64: 2, 256>}, {transform_indices = @transform_2, window_bounds = array<i64: 2, 1>}, {transform_indices = @transform_3, window_bounds = array<i64: 2, 128>}]} {
    %c0_i32 = arith.constant 0 : i32
    %0 = arith.cmpi eq, %arg1, %c0_i32 : i32
    %1 = arith.extui %0 : i1 to i32
    %c0_i32_0 = arith.constant 0 : i32
    %2 = arith.cmpi ne, %1, %c0_i32_0 : i32
    scf.if %2 {
      %71 = tpu.iota {dimensions = array<i32: 0>} : vector<256x256xi32>
      %72 = tpu.iota {dimensions = array<i32: 1>} : vector<256x256xi32>
      %73 = arith.cmpi sle, %71, %72 : vector<256x256xi32>
      %74 = arith.extui %73 : vector<256x256xi1> to vector<256x256xi32>
      %75 = arith.sitofp %74 : vector<256x256xi32> to vector<256x256xf32>
      %76 = arith.truncf %75 : vector<256x256xf32> to vector<256x256xbf16>
      %c0_34 = arith.constant 0 : index
      %c0_35 = arith.constant 0 : index
      %77 = vector.load %arg6[%c0_34, %c0_35] : memref<256x256xbf16, #tpu.memory_space<vmem>>, vector<256x256xbf16>
      tpu.vector_store %arg6[%c0_34, %c0_35], %76 {strides = array<i32>} : memref<256x256xbf16, #tpu.memory_space<vmem>>, vector<256x256xbf16>,
      %cst_36 = arith.constant 0.000000e+00 : f32
      %78 = vector.broadcast %cst_36 : f32 to vector<2x1xf32>
      %c0_37 = arith.constant 0 : index
      %c0_38 = arith.constant 0 : index
      %79 = vector.load %arg7[%c0_37, %c0_38] : memref<2x1xf32, #tpu.memory_space<vmem>>, vector<2x1xf32>
      tpu.vector_store %arg7[%c0_37, %c0_38], %78 {strides = array<i32>} : memref<2x1xf32, #tpu.memory_space<vmem>>, vector<2x1xf32>,
      %cst_39 = arith.constant 0.000000e+00 : f32
      %80 = vector.broadcast %cst_39 : f32 to vector<2x1xf32>
      %c0_40 = arith.constant 0 : index
      %c0_41 = arith.constant 0 : index
      %81 = vector.load %arg8[%c0_40, %c0_41] : memref<2x1xf32, #tpu.memory_space<vmem>>, vector<2x1xf32>
      tpu.vector_store %arg8[%c0_40, %c0_41], %80 {strides = array<i32>} : memref<2x1xf32, #tpu.memory_space<vmem>>, vector<2x1xf32>,
      %cst_42 = arith.constant 0.000000e+00 : f32
      %82 = vector.broadcast %cst_42 : f32 to vector<2x1xf32>
      %c0_43 = arith.constant 0 : index
      %c0_44 = arith.constant 0 : index
      %83 = vector.load %arg9[%c0_43, %c0_44] : memref<2x1xf32, #tpu.memory_space<vmem>>, vector<2x1xf32>
      tpu.vector_store %arg9[%c0_43, %c0_44], %82 {strides = array<i32>} : memref<2x1xf32, #tpu.memory_space<vmem>>, vector<2x1xf32>,
    } else {
    }
    %c0 = arith.constant 0 : index
    %c0_1 = arith.constant 0 : index
    %3 = vector.load %arg4[%c0, %c0_1] : memref<2x1xf32, #tpu.memory_space<vmem>>, vector<2x1xf32>
    %cst = arith.constant 2.560000e+02 : f32
    %4 = vector.broadcast %cst : f32 to vector<2x1xf32>
    %5 = arith.subf %4, %3 : vector<2x1xf32>
    %c256_i32 = arith.constant 256 : i32
    %6 = arith.muli %arg1, %c256_i32 : i32
    %c0_i32_2 = arith.constant 0 : i32
    %c256_i32_3 = arith.constant 256 : i32
    %7 = arith.muli %c0_i32_2, %c256_i32_3 : i32
    %8 = tpu.assume_multiple %7, 128 : i32
    %c0_4 = arith.constant 0 : index
    %9 = arith.index_cast %8 : i32 to index
    %10 = vector.load %arg2[%c0_4, %9] : memref<2x256xf32, #tpu.memory_space<vmem>>, vector<2x256xf32>
    %c0_5 = arith.constant 0 : index
    %11 = arith.index_cast %8 : i32 to index
    %12 = vector.load %arg3[%c0_5, %11] : memref<2x256xbf16, #tpu.memory_space<vmem>>, vector<2x256xbf16>
    %cst_6 = arith.constant 0.000000e+00 : f32
    %13 = vector.broadcast %cst_6 : f32 to vector<2x256xf32>
    %14 = arith.maximumf %10, %13 : vector<2x256xf32>
    %c0_7 = arith.constant 0 : index
    %c0_8 = arith.constant 0 : index
    %15 = vector.load %arg6[%c0_7, %c0_8] : memref<256x256xbf16, #tpu.memory_space<vmem>>, vector<256x256xbf16>
    %cst_9 = arith.constant dense<0.000000e+00> : vector<2x256xf32>
    %16 = tpu.matmul %12, %15, %cst_9 {dimension_numbers = #tpu.dot_dimension_numbers<[1], [0], [0], [1], [0, 0, 1, 1], [], []>} : vector<2x256xbf16>, vector<256x256xbf16>, vector<2x256xf32> -> vector<2x256xf32>
    %c0_10 = arith.constant 0 : index
    %c0_11 = arith.constant 0 : index
    %17 = vector.load %arg7[%c0_10, %c0_11] : memref<2x1xf32, #tpu.memory_space<vmem>>, vector<2x1xf32>
    %18 = vector.broadcast %17 : vector<2x1xf32> to vector<2x256xf32>
    %19 = arith.addf %18, %16 : vector<2x256xf32>
    %20 = tpu.iota {dimensions = array<i32: 1>} : vector<2x256xi32>
    %c1_i32 = arith.constant 1 : i32
    %21 = vector.broadcast %c1_i32 : i32 to vector<2x256xi32>
    %22 = arith.addi %20, %21 : vector<2x256xi32>
    %23 = vector.broadcast %6 : i32 to vector<2x256xi32>
    %24 = arith.addi %22, %23 : vector<2x256xi32>
    %25 = vector.broadcast %8 : i32 to vector<2x256xi32>
    %26 = arith.addi %24, %25 : vector<2x256xi32>
    %27 = arith.sitofp %26 : vector<2x256xi32> to vector<2x256xf32>
    %28 = arith.subf %27, %19 : vector<2x256xf32>
    %29 = vector.broadcast %3 : vector<2x1xf32> to vector<2x256xf32>
    %30 = arith.subf %29, %19 : vector<2x256xf32>
    %31 = vector.broadcast %3 : vector<2x1xf32> to vector<2x256xf32>
    %32 = arith.addf %31, %28 : vector<2x256xf32>
    %33 = arith.divf %30, %32 : vector<2x256xf32>
    %cst_12 = arith.constant 1.000000e+00 : f32
    %34 = vector.broadcast %cst_12 : f32 to vector<2x256xf32>
    %35 = arith.subf %34, %33 : vector<2x256xf32>
    %36 = vector.broadcast %5 : vector<2x1xf32> to vector<2x256xf32>
    %37 = arith.subf %36, %28 : vector<2x256xf32>
    %38 = vector.broadcast %5 : vector<2x1xf32> to vector<2x256xf32>
    %39 = arith.addf %38, %19 : vector<2x256xf32>
    %40 = arith.divf %37, %39 : vector<2x256xf32>
    %cst_13 = arith.constant 1.000000e+00 : f32
    %41 = vector.broadcast %cst_13 : f32 to vector<2x256xf32>
    %42 = arith.subf %41, %40 : vector<2x256xf32>
    %43 = arith.addf %35, %42 : vector<2x256xf32>
    %c1_i32_14 = arith.constant 1 : i32
    %44 = tpu.dynamic_rotate %43 by %c1_i32_14 dim 1 : vector<2x256xf32>, i32 -> vector<2x256xf32>
    %c0_i32_15 = arith.constant 0 : i32
    %45 = vector.broadcast %c0_i32_15 : i32 to vector<2x256xi32>
    %46 = arith.cmpi eq, %20, %45 : vector<2x256xi32>
    %c0_16 = arith.constant 0 : index
    %c0_17 = arith.constant 0 : index
    %47 = vector.load %arg8[%c0_16, %c0_17] : memref<2x1xf32, #tpu.memory_space<vmem>>, vector<2x1xf32>
    %48 = vector.shape_cast %47 : vector<2x1xf32> to vector<2x1xf32>
    %49 = vector.broadcast %48 : vector<2x1xf32> to vector<2x256xf32>
    %50 = arith.select %46, %49, %44 : vector<2x256xi1>, vector<2x256xf32>
    %51 = arith.subf %43, %50 : vector<2x256xf32>
    %c0_18 = arith.constant 0 : index
    %c0_19 = arith.constant 0 : index
    %52 = vector.load %arg9[%c0_18, %c0_19] : memref<2x1xf32, #tpu.memory_space<vmem>>, vector<2x1xf32>
    %53 = arith.mulf %14, %51 : vector<2x256xf32>
    %cst_20 = arith.constant dense<0.000000e+00> : vector<2xf32>
    %54 = vector.multi_reduction <add>, %53, %cst_20 [1] : vector<2x256xf32> to vector<2xf32>
    %55 = vector.shape_cast %54 : vector<2xf32> to vector<2x1xf32>
    %cst_21 = arith.constant 5.000000e-01 : f32
    %56 = vector.broadcast %cst_21 : f32 to vector<2x1xf32>
    %57 = arith.mulf %56, %55 : vector<2x1xf32>
    %58 = arith.addf %52, %57 : vector<2x1xf32>
    %c0_22 = arith.constant 0 : index
    %c0_23 = arith.constant 0 : index
    %59 = vector.load %arg9[%c0_22, %c0_23] : memref<2x1xf32, #tpu.memory_space<vmem>>, vector<2x1xf32>
    tpu.vector_store %arg9[%c0_22, %c0_23], %58 {strides = array<i32>} : memref<2x1xf32, #tpu.memory_space<vmem>>, vector<2x1xf32>,
    %c0_24 = arith.constant 0 : index
    %c0_25 = arith.constant 0 : index
    %60 = vector.load %arg7[%c0_24, %c0_25] : memref<2x1xf32, #tpu.memory_space<vmem>>, vector<2x1xf32>
    %61 = arith.extf %12 : vector<2x256xbf16> to vector<2x256xf32>
    %cst_26 = arith.constant dense<0.000000e+00> : vector<2xf32>
    %62 = vector.multi_reduction <add>, %61, %cst_26 [1] : vector<2x256xf32> to vector<2xf32>
    %63 = vector.shape_cast %62 : vector<2xf32> to vector<2x1xf32>
    %64 = arith.addf %60, %63 : vector<2x1xf32>
    %c0_27 = arith.constant 0 : index
    %c0_28 = arith.constant 0 : index
    %65 = vector.load %arg7[%c0_27, %c0_28] : memref<2x1xf32, #tpu.memory_space<vmem>>, vector<2x1xf32>
    tpu.vector_store %arg7[%c0_27, %c0_28], %64 {strides = array<i32>} : memref<2x1xf32, #tpu.memory_space<vmem>>, vector<2x1xf32>,
    %66 = vector.extract_strided_slice %43 {offsets = [0, 255], sizes = [2, 1], strides = [1, 1]} : vector<2x256xf32> to vector<2x1xf32>
    %c0_29 = arith.constant 0 : index
    %c0_30 = arith.constant 0 : index
    %67 = vector.load %arg8[%c0_29, %c0_30] : memref<2x1xf32, #tpu.memory_space<vmem>>, vector<2x1xf32>
    tpu.vector_store %arg8[%c0_29, %c0_30], %66 {strides = array<i32>} : memref<2x1xf32, #tpu.memory_space<vmem>>, vector<2x1xf32>,
    %c1_i32_31 = arith.constant 1 : i32
    %c0_i32_32 = arith.constant 0 : i32
    %68 = arith.cmpi eq, %arg1, %c0_i32_32 : i32
    %69 = arith.extui %68 : i1 to i32
    %c0_i32_33 = arith.constant 0 : i32
    %70 = arith.cmpi ne, %69, %c0_i32_33 : i32
    scf.if %70 {
      %c0_34 = arith.constant 0 : index
      %c0_35 = arith.constant 0 : index
      %71 = vector.load %arg9[%c0_34, %c0_35] : memref<2x1xf32, #tpu.memory_space<vmem>>, vector<2x1xf32>
      %72 = vector.shape_cast %71 : vector<2x1xf32> to vector<2x1xf32>
      %73 = vector.broadcast %72 : vector<2x1xf32> to vector<2x128xf32>
      %c0_36 = arith.constant 0 : index
      %c0_37 = arith.constant 0 : index
      %74 = vector.load %arg5[%c0_36, %c0_37] : memref<2x128xf32, #tpu.memory_space<vmem>>, vector<2x128xf32>
      tpu.vector_store %arg5[%c0_36, %c0_37], %73 {strides = array<i32>} : memref<2x128xf32, #tpu.memory_space<vmem>>, vector<2x128xf32>,
    } else {
    }
    return
  }
  func.func @transform_0(%arg0: i32, %arg1: i32) -> (i32, i32) {
    %c0_i32 = arith.constant 0 : i32
    return %arg0, %arg1 : i32, i32
  }
  func.func @transform_1(%arg0: i32, %arg1: i32) -> (i32, i32) {
    %c0_i32 = arith.constant 0 : i32
    return %arg0, %arg1 : i32, i32
  }
  func.func @transform_2(%arg0: i32, %arg1: i32) -> (i32, i32) {
    %c0_i32 = arith.constant 0 : i32
    %c0_i32_0 = arith.constant 0 : i32
    return %arg0, %c0_i32 : i32, i32
  }
  func.func @transform_3(%arg0: i32, %arg1: i32) -> (i32, i32) {
    %c0_i32 = arith.constant 0 : i32
    %c0_i32_0 = arith.constant 0 : i32
    return %arg0, %c0_i32 : i32, i32
  }
}

</mosaic_0001>

<bundles_post_ra>
// kernel: neg.3
= control target key start
LH: loop header
LB: loop body
LE: loop exit
PB: predicated region body
PF: predicated region fallthrough
CT: control target
= control target key end

     0   :  { %s40_s0 = inlined_call_operand.vmem [shape: f32[2,256], index: 0, kind: input, shape index: {}]   ;;  %s41_s1 = inlined_call_operand.vmem [shape: f32[2,256], index: 1, kind: output, shape index: {}]  }
   0x1   :  { %v2_v0 = vld [vmem:[%s40_s0] sm:$0x3]  ;;  %v16_v1 = vld [vmem:[%s40_s0 + $0x2] sm:$0x3] }
   0x2   :  { %v5_v2 = vxor.u32 2147483648, %v2_v0  ;;  %v12_v3 = vxor.u32 2147483648, %v16_v1 }
   0x4   :  { %7 = vst [vmem:[%s41_s1] sm:$0x3] %v5_v2  ;;  %17 = vst [vmem:[%s41_s1 + $0x2] sm:$0x3] %v12_v3 }

// kernel: combine_loss.2
= control target key start
LH: loop header
LB: loop body
LE: loop exit
PB: predicated region body
PF: predicated region fallthrough
CT: control target
= control target key end

     0   :  { %s93_s0 = inlined_call_operand.vmem [shape: f32[8,128], index: 0, kind: input, shape index: {}]   ;;  %s94_s1 = inlined_call_operand.vmem [shape: bf16[8,128], index: 1, kind: input, shape index: {}]   ;;  %s95_s3 = inlined_call_operand.vmem [shape: f32[8,128], index: 3, kind: output, shape index: {1}]   ;;  %s96_s2 = inlined_call_operand.vmem [shape: f32[8,128], index: 2, kind: output, shape index: {0}]  }
   0x1   :  { %v13_v0 = vld [vmem:[%s93_s0] sm:$0xff] }
   0x2   :  { %v14_v1 = vld [vmem:[%s94_s1] sm:$0xf]  ;;  %v22_v3 = vand.u32 2147483647, %v13_v0  ;;  %v19_v17 = vmax.f32 %v13_v0, 0.0 }
   0x3   :  { %v15_v2 = vunpack.c.l.bf16 %v14_v1 }
   0x4   :  { %v23_v5 = vsub.f32 0.0, %v22_v3 }
   0x5   :  { %v16_v4 = vmul.f32 2.0, %v15_v2  ;;  %v20_v18 = vmul.f32 %v15_v2, %v13_v0 }
   0x6   :  { %v24_v7 = vmul.f32 1.442695, %v23_v5 }
   0x7   :  { %v52_v6 = vadd.f32 -1.0, %v16_v4  ;;  %v21_v22 = vsub.f32 %v19_v17, %v20_v18 }
   0x8   :  { %53 = vpow2.f32 %v24_v7 }
   0x9   :  { %v18_v8 = vmul.f32 %v52_v6, %v13_v0 }
   0xb   :  { %v36_v9 = vmul.f32 1.442695, %v18_v8  ;;  %v42_v10 = vsub.f32 1.0, %v18_v8 }
   0xd   :  { %55 = vpow2.f32 %v36_v9  ;;  %43 = vst [vmem:[%s95_s3] sm:$0xff] %v42_v10 }
  0x12   :  { %v54_v11 = vpop.eup %53 }
  0x13   :  { %v26_v12 = vadd.f32 1.0, %v54_v11  ;;  %v29_v14 = vmul.f32 -0.5, %v54_v11  ;;  %v32_v19 = vand.u32 2147483647, %v54_v11 }
  0x15   :  { %57 = vlog2.f32 %v26_v12  ;;  %v30_v16 = vadd.f32 1.0, %v29_v14  ;;  %vm33_vm0 = vcmp.lt.f32.partialorder %v32_v19, 0.0004427343 }
  0x17   :  { %v56_v13 = vpop.eup %55  ;;  %v31_v20 = vmul.f32 %v54_v11, %v30_v16 }
  0x18   :  { %v38_v15 = vadd.f32 1.0, %v56_v13 }
  0x1a   :  { %59 = vrsqrt.f32 %v38_v15 }
  0x1f   :  { %v58_v21 = vpop.eup %57 }
  0x20   :  { %v28_v23 = vmul.f32 0.6931472, %v58_v21 }
  0x22   :  { %v34_v24 = vsel %vm33_vm0, %v31_v20, %v28_v23 }
  0x23   :  { %v35_v26 = vadd.f32 %v34_v24, %v21_v22 }
  0x24   :  { %v60_v25 = vpop.eup %59 }
  0x25   :  { %v40_v27 = vmul.f32 %v60_v25, %v35_v26 }
  0x27   :  { %41 = vst [vmem:[%s96_s2] sm:$0xff] %v40_v27 }

// kernel: combine_loss.3
= control target key start
LH: loop header
LB: loop body
LE: loop exit
PB: predicated region body
PF: predicated region fallthrough
CT: control target
= control target key end

     0   :  { %v18_v0 = vlaneseq  ;;  %v646_v1 = vmov 1.0|1.0   ;;  %vm310_vm0 = vcmask 1024   ;;  %v647_v4 = vmov 0   ;;  %s810_s2 = inlined_call_operand.vmem [shape: f32[2,1], index: 2, kind: input, shape index: {}]   ;;  %s811_s1 = inlined_call_operand.vmem [shape: bf16[2,256], index: 1, kind: input, shape index: {}]   ;;  %s812_s0 = inlined_call_operand.vmem [shape: f32[2,256], index: 0, kind: input, shape index: {}]   ;;  %s813_s3 = inlined_call_operand.vmem [shape: f32[2,128], index: 3, kind: output, shape index: {}]  }
   0x1   :  { %377 = vmatprep.subr.bf16.mxu0 %v646_v1  ;;  %636 = vset.pattern.permute.xlu0 %v647_v4  ;;  %v648_v5 = vmov 0.0   ;;  %v314_v6 = vld [vmem:[%s810_s2] sm:$0x3]  ;;  %v649_v17 = vmov 1966171168   ;;  %v650_v42 = vmov 0.0|0.0  }
   0x2   :  { %v674_v2 = vshrl.u32 %v18_v0, 7  ;;  %v676_v3 = vand.u32 127, %v18_v0  ;;  %311 = vst.msk [vmem:[#allocation3] sm:$0x3] %vm310_vm0, %v648_v5  ;;  %312 = vst.msk [vmem:[#allocation4] sm:$0x3] %vm310_vm0, %v648_v5  ;;  %637 = vset.pattern.permute.xlu1 %v647_v4  ;;  %v354_v18 = vunpack.c.l.s4 %v649_v17 }
   0x3   :  { %313 = vst.msk [vmem:[#allocation5] sm:$0x3] %vm310_vm0, %v648_v5  ;;  %v315_v7 = vsub.f32 256.0, %v314_v6  ;;  %v715_v24 = vld [vmem:[%s811_s1] sm:$0x3]  ;;  %s651_s1 = smov 1  }
   0x4   :  { %v20_v8 = vadd.s32 8, %v674_v2  ;;  %vm54_vm1 = vcmp.le.s32.totalorder %v674_v2, %v676_v3  ;;  %v21_v9 = vadd.s32 16, %v674_v2  ;;  %v22_v10 = vadd.s32 24, %v674_v2 }
   0x5   :  { %v23_v11 = vadd.s32 32, %v674_v2  ;;  %458 = vperm.xlu1 %637, %v315_v7   ;;  %v24_v12 = vadd.s32 40, %v674_v2  ;;  %v25_v14 = vadd.s32 48, %v674_v2  ;;  %v26_v15 = vadd.s32 56, %v674_v2 }
   0x6   :  { %vm56_vm2 = vcmp.le.s32.totalorder %v20_v8, %v676_v3  ;;  %vm58_vm3 = vcmp.le.s32.totalorder %v21_v9, %v676_v3  ;;  %vm60_vm4 = vcmp.le.s32.totalorder %v22_v10, %v676_v3  ;;  %v27_v19 = vadd.s32 64, %v674_v2 }
   0x7   :  { %vm597_vm5 = vmpackc.low %vm56_vm2, %vm54_vm1  ;;  %vm62_vm7 = vcmp.le.s32.totalorder %v23_v11, %v676_v3  ;;  %vm64_vm8 = vcmp.le.s32.totalorder %v24_v12, %v676_v3  ;;  %vm66_vm10 = vcmp.le.s32.totalorder %v25_v14, %v676_v3  ;;  %vm68_vm11 = vcmp.le.s32.totalorder %v26_v15, %v676_v3 }
   0x8   :  { %598 = vmatpush1.bf16.msk.msra.mxu0 %vm597_vm5, %v646_v1  ;;  %vm599_vm6 = vmpackc.low %vm60_vm4, %vm58_vm3  ;;  %v28_v20 = vadd.s32 72, %v674_v2  ;;  %v355_v21 = vunpack.c.0.s8 %v354_v18  ;;  %vm70_vm13 = vcmp.le.s32.totalorder %v27_v19, %v676_v3  ;;  %v29_v22 = vadd.s32 80, %v674_v2 }
   0x9   :  { %379 = vmatprep.subr.bf16.mxu0 %v646_v1  ;;  %v418_v13 = vld [vmem:[#allocation3] sm:$0x3]  ;;  %v482_v16 = vld [vmem:[#allocation4] sm:$0x3]  ;;  %vm601_vm9 = vmpackc.low %vm64_vm8, %vm62_vm7  ;;  %v30_v23 = vadd.s32 88, %v674_v2  ;;  %v31_v26 = vadd.s32 96, %v674_v2 }
   0xa   :  { %421 = vperm.xlu0 %636, %v418_v13   ;;  %485 = vperm.xlu1 %637, %v482_v16   ;;  %vm603_vm12 = vmpackc.low %vm68_vm11, %vm66_vm10  ;;  %vm72_vm14 = vcmp.le.s32.totalorder %v28_v20, %v676_v3  ;;  %v719_v25 = vsub.s32 %v355_v21, %v674_v2  ;;  %vm74_vm1 = vcmp.le.s32.totalorder %v29_v22, %v676_v3  ;;  %v32_v27 = vadd.s32 104, %v674_v2 }
   0xb   :  { %vm605_vm15 = vmpackc.low %vm72_vm14, %vm70_vm13  ;;  %vm76_vm2 = vcmp.le.s32.totalorder %v30_v23, %v676_v3  ;;  %v33_v30 = vadd.s32 112, %v674_v2  ;;  %vm78_vm4 = vcmp.le.s32.totalorder %v31_v26, %v676_v3  ;;  %v34_v31 = vadd.s32 120, %v674_v2 }
   0xc   :  { %600 = vmatpush1.bf16.msk.msra.mxu0 %vm599_vm6, %v646_v1  ;;  %v728_v28 = vrot.slane %v715_v24, %v719_v25  ;;  %vm607_vm3 = vmpackc.low %vm76_vm2, %vm74_vm1  ;;  %vm80_vm5 = vcmp.le.s32.totalorder %v32_v27, %v676_v3  ;;  %v35_v33 = vadd.s32 128, %v674_v2  ;;  %v36_v34 = vadd.s32 136, %v674_v2 }
   0xd   :  { %381 = vmatprep.subr.bf16.mxu0 %v646_v1  ;;  %v742_v35 = vadd.s32 128, %v676_v3  ;;  %vm609_vm6 = vmpackc.low %vm80_vm5, %vm78_vm4  ;;  %vm82_vm7 = vcmp.le.s32.totalorder %v33_v30, %v676_v3  ;;  %vm84_vm8 = vcmp.le.s32.totalorder %v34_v31, %v676_v3  ;;  %v37_v36 = vadd.s32 144, %v674_v2 }
   0xe   :  { %443 = vperm.xlu0 %636, %v314_v6   ;;  %v360_v29 = vcombine.high %v728_v28, %v728_v28  ;;  %v38_v37 = vadd.s32 152, %v674_v2  ;;  %vm611_vm11 = vmpackc.low %vm84_vm8, %vm82_vm7  ;;  %v39_v38 = vadd.s32 160, %v674_v2  ;;  %v40_v39 = vadd.s32 168, %v674_v2 }
   0xf   :  { %vm89_vm10 = vcmp.le.s32.totalorder %v36_v34, %v742_v35  ;;  %vm91_vm13 = vcmp.le.s32.totalorder %v37_v36, %v742_v35  ;;  %v41_v40 = vadd.s32 176, %v674_v2  ;;  %v42_v41 = vadd.s32 184, %v674_v2 }
  0x10   :  { %602 = vmatpush1.bf16.msk.msra.mxu0 %vm601_vm9, %v646_v1  ;;  %v374_v32 = vrot.slane %v360_v29, %v719_v25  ;;  %vm87_vm9 = vcmp.le.s32.totalorder %v35_v33, %v742_v35  ;;  %vm93_vm14 = vcmp.le.s32.totalorder %v38_v37, %v742_v35  ;;  %vm95_vm1 = vcmp.le.s32.totalorder %v39_v38, %v742_v35 }
  0x11   :  { %383 = vmatprep.subr.bf16.mxu0 %v646_v1  ;;  %vm97_vm2 = vcmp.le.s32.totalorder %v40_v39, %v742_v35  ;;  %vm99_vm4 = vcmp.le.s32.totalorder %v41_v40, %v742_v35  ;;  %vm101_vm5 = vcmp.le.s32.totalorder %v42_v41, %v742_v35  ;;  %v43_v43 = vadd.s32 192, %v674_v2 }
  0x12   :  { %409 = vmatprep.mubr.bf16.mxu0 %v374_v32  ;;  %v44_v44 = vadd.s32 200, %v674_v2  ;;  %v45_v45 = vadd.s32 208, %v674_v2  ;;  %v46_v46 = vadd.s32 216, %v674_v2  ;;  %v47_v47 = vadd.s32 224, %v674_v2 }
  0x13   :  { %vm103_vm7 = vcmp.le.s32.totalorder %v43_v43, %v742_v35  ;;  %v48_v48 = vadd.s32 232, %v674_v2  ;;  %v49_v49 = vadd.s32 240, %v674_v2  ;;  %v50_v50 = vadd.s32 248, %v674_v2  ;;  %v317_v43 = vld [vmem:[%s812_s0] sm:$0xf] }
  0x14   :  { %604 = vmatpush1.bf16.msk.msra.mxu0 %vm603_vm12, %v646_v1  ;;  %vm613_vm12 = vmpackc.low %vm89_vm10, %vm87_vm9  ;;  %vm105_vm8 = vcmp.le.s32.totalorder %v44_v44, %v742_v35  ;;  %vm107_vm10 = vcmp.le.s32.totalorder %v45_v45, %v742_v35  ;;  %v367_v51 = vrot.slane %v728_v28, %v719_v25  ;;  %v429_v52 = vadd.s32 1, %v676_v3 }
  0x15   :  { %385 = vmatprep.subr.bf16.mxu0 %v646_v1  ;;  %vm621_vm9 = vmpackc.low %vm105_vm8, %vm103_vm7  ;;  %v430_v53 = vadd.s32 1, %v742_v35  ;;  %v652_v28 = vmov 1983009808   ;;  %v527_v31 = vunpack.c.l.bf16 %v715_v24 }
  0x16   :  { %v437_v55 = vcvt.s32.f32 %v429_v52  ;;  %v497_v29 = vunpack.c.l.s4 %v652_v28 }
  0x17   :  { %v438_v58 = vcvt.s32.f32 %v430_v53  ;;  %v526_v53 = vld [vmem:[#allocation3] sm:$0x3] }
  0x18   :  { %606 = vmatpush1.bf16.msk.msra.mxu0 %vm605_vm15, %v646_v1  ;;  %vm615_vm15 = vmpackc.low %vm93_vm14, %vm91_vm13  ;;  %vm111_vm13 = vcmp.le.s32.totalorder %v47_v47, %v742_v35  ;;  %vm113_vm14 = vcmp.le.s32.totalorder %v48_v48, %v742_v35  ;;  %v498_v30 = vunpack.c.0.s8 %v497_v29 }
  0x19   :  { %387 = vmatprep.subr.bf16.mxu0 %v646_v1 }
  0x1a   :  { %v501_v32 = vsub.s32 %v498_v30, %v674_v2 }
  0x1c   :  { %608 = vmatpush1.bf16.msk.msra.mxu0 %vm607_vm3, %v646_v1  ;;  %vm617_vm3 = vmpackc.low %vm97_vm2, %vm95_vm1  ;;  %vm115_vm1 = vcmp.le.s32.totalorder %v49_v49, %v742_v35  ;;  %vm117_vm2 = vcmp.le.s32.totalorder %v50_v50, %v742_v35  ;;  %v535_v33 = vrot.slane %v527_v31, %v501_v32 }
  0x1d   :  { %389 = vmatprep.subr.bf16.mxu0 %v646_v1 }
  0x1e   :  { %v536_v34 = vcombine.high %v535_v33, %v535_v33 }
  0x20   :  { %610 = vmatpush1.bf16.msk.msra.mxu0 %vm609_vm6, %v646_v1  ;;  %vm619_vm6 = vmpackc.low %vm101_vm5, %vm99_vm4  ;;  %vm516_vm4 = vcmask 1041408   ;;  %vm477_vm5 = vcmp.lt.s32.totalorder %v676_v3, 1 }
  0x21   :  { %391 = vmatprep.subr.bf16.mxu0 %v646_v1  ;;  %v540_v36 = vsel %vm516_vm4, %v536_v34, 0.0 }
  0x24   :  { %612 = vmatpush1.bf16.msk.msra.mxu0 %vm611_vm11, %v646_v1  ;;  %vm109_vm11 = vcmp.le.s32.totalorder %v46_v46, %v742_v35  ;;  %v539_v35 = vsel %vm516_vm4, %v535_v33, 0.0  ;;  %v319_v46 = vmax.f32 %v317_v43, 0.0 }
  0x25   :  { %614 = vmatprep.subr.msk.bf16.mxu0 %vm613_vm12, %v646_v1  ;;  %vm623_vm12 = vmpackc.low %vm109_vm11, %vm107_vm10  ;;  %v541_v37 = vadd.f32 %v540_v36, %v539_v35 }
  0x28   :  { %394 = vmatpush1.bf16.msra.mxu0 %v650_v42 }
  0x29   :  { %616 = vmatprep.subr.msk.bf16.mxu0 %vm615_vm15, %v646_v1  ;;  %vm625_vm15 = vmpackc.low %vm113_vm14, %vm111_vm13 }
  0x2c   :  { %396 = vmatpush1.bf16.msra.mxu0 %v650_v42 }
  0x2d   :  { %618 = vmatprep.subr.msk.bf16.mxu0 %vm617_vm3, %v646_v1  ;;  %vm627_vm3 = vmpackc.low %vm117_vm2, %vm115_vm1 }
  0x30   :  { %398 = vmatpush1.bf16.msra.mxu0 %v650_v42 }
  0x31   :  { %620 = vmatprep.subr.msk.bf16.mxu0 %vm619_vm6, %v646_v1  ;;  %vm480_vm6 = vcmp.eq.s32.totalorder %v676_v3, 0 }
  0x34   :  { %400 = vmatpush1.bf16.msra.mxu0 %v650_v42 }
  0x35   :  { %622 = vmatprep.subr.msk.bf16.mxu0 %vm621_vm9, %v646_v1 }
  0x38   :  { %402 = vmatpush1.bf16.msra.mxu0 %v650_v42 }
  0x39   :  { %624 = vmatprep.subr.msk.bf16.mxu0 %vm623_vm12, %v646_v1 }
  0x3c   :  { %404 = vmatpush1.bf16.msra.mxu0 %v650_v42 }
  0x3d   :  { %626 = vmatprep.subr.msk.bf16.mxu0 %vm625_vm15, %v646_v1 }
  0x40   :  { %406 = vmatpush1.bf16.msra.mxu0 %v650_v42 }
  0x41   :  { %628 = vmatprep.subr.msk.bf16.mxu0 %vm627_vm3, %v646_v1 }
  0x44   :  { %408 = vmatpush1.bf16.msra.mxu0 %v650_v42 }
  0x47   :  { %410 = vmatmul.mubr.bf16.vlgmr.msra.gmra.mrb[0].mxu0 %v367_v51 }
  0x84   :  { %v459_v57 = vpop.permute.xlu1 %458 }
  0x89   :  { %v422_v54 = vpop.permute.xlu0 %421  ;;  %v486_v38 = vpop.permute.xlu1 %485 }
  0x8d   :  { %v444_v4 = vpop.permute.xlu0 %443 }
 0x11a   :  { %v411_v56 = vpop.f32.mrb[0].mxu0 }
 0x11b   :  { %v424_v59 = vadd.f32 %v422_v54, %v411_v56  ;;  %v413_v60 = vpop.f32.mrb[1].mxu0 }
 0x11c   :  { %v425_v61 = vadd.f32 %v422_v54, %v413_v60  ;;  %v415_v62 = vpop.f32.mrb[2].mxu0 }
 0x11d   :  { %v439_v63 = vsub.f32 %v437_v55, %v424_v59  ;;  %v463_v0 = vadd.f32 %v459_v57, %v424_v59  ;;  %v416_v1 = vpop.f32.mrb[3].mxu0  ;;  %v446_v13 = vsub.f32 %v444_v4, %v424_v59 }
 0x11e   :  { %v440_v5 = vsub.f32 %v438_v58, %v425_v61  ;;  %v464_v6 = vadd.f32 %v459_v57, %v425_v61  ;;  %v447_v16 = vsub.f32 %v444_v4, %v425_v61 }
 0x11f   :  { %v448_v7 = vadd.f32 %v444_v4, %v439_v63  ;;  %638 = vrcp.f32 %v463_v0  ;;  %v461_v9 = vsub.f32 %v459_v57, %v439_v63 }
 0x120   :  { %v449_v8 = vadd.f32 %v444_v4, %v440_v5  ;;  %640 = vrcp.f32 %v464_v6  ;;  %v462_v11 = vsub.f32 %v459_v57, %v440_v5  ;;  %v492_v57 = vld [vmem:[#allocation5] sm:$0x3] }
 0x121   :  { %642 = vrcp.f32 %v448_v7 }
 0x122   :  { %644 = vrcp.f32 %v449_v8 }
 0x129   :  { %v639_v10 = vpop.eup %638 }
 0x12a   :  { %v641_v12 = vpop.eup %640  ;;  %v466_v14 = vmul.f32 %v639_v10, %v461_v9 }
 0x12b   :  { %v643_v15 = vpop.eup %642  ;;  %v468_v17 = vmul.f32 %v641_v12, %v462_v11 }
 0x12c   :  { %v645_v18 = vpop.eup %644  ;;  %v451_v19 = vmul.f32 %v643_v15, %v446_v13  ;;  %v469_v22 = vsub.f32 1.0, %v466_v14 }
 0x12d   :  { %v453_v20 = vmul.f32 %v645_v18, %v447_v16  ;;  %v470_v25 = vsub.f32 1.0, %v468_v17 }
 0x12e   :  { %v454_v21 = vsub.f32 1.0, %v451_v19 }
 0x12f   :  { %v455_v23 = vsub.f32 1.0, %v453_v20 }
 0x130   :  { %v471_v26 = vadd.f32 %v469_v22, %v454_v21 }
 0x131   :  { %v472_v27 = vadd.f32 %v470_v25, %v455_v23 }
 0x132   :  { %473 = vrot.lane.b32.xlu0 %v471_v26, %s651_s1 }
 0x133   :  { %475 = vrot.lane.b32.xlu1 %v472_v27, %s651_s1 }
 0x157   :  { %542 = vadd.xlane.f32.xlu1 %v541_v37 }
 0x168   :  { %547 = vrot.lane.b32.xlu1 %v472_v27, %s651_s1 }
 0x1a4   :  { %v474_v39 = vpop.permute.xlu0 %473 }
 0x1a5   :  { %v476_v40 = vpop.permute.xlu1 %475 }
 0x1a6   :  { %v478_v24 = vsel %vm477_vm5, %v474_v39, %v476_v40  ;;  %v479_v41 = vsel %vm477_vm5, %v476_v40, %v474_v39 }
 0x1a7   :  { %v488_v2 = vsel %vm480_vm6, %v486_v38, %v479_v41  ;;  %v491_v42 = vsub.f32 %v472_v27, %v478_v24 }
 0x1a8   :  { %v490_v44 = vsub.f32 %v471_v26, %v488_v2 }
 0x1aa   :  { %v495_v45 = vcombine.low %v490_v44, %v491_v42 }
 0x1ac   :  { %v502_v47 = vrot.slane %v495_v45, %v501_v32 }
 0x1ae   :  { %v504_v48 = vmul.f32 %v502_v47, %v319_v46 }
 0x1b0   :  { %v512_v49 = vrot.slane %v504_v48, %v501_v32 }
 0x1b2   :  { %v513_v50 = vcombine.high %v512_v49, %v512_v49  ;;  %v517_v51 = vsel %vm516_vm4, %v512_v49, 0.0 }
 0x1b4   :  { %v518_v3 = vsel %vm516_vm4, %v513_v50, 0.0 }
 0x1b5   :  { %v519_v52 = vadd.f32 %v518_v3, %v517_v51 }
 0x1b7   :  { %520 = vadd.xlane.f32.xlu0 %v519_v52 }
 0x1e4   :  { %v543_v54 = vpop.xlane.xlu1 %542 }
 0x1e5   :  { %v544_v55 = vadd.f32 %v543_v54, %v526_v53 }
 0x1e7   :  { %545 = vst.msk [vmem:[#allocation3] sm:$0x3] %vm310_vm0, %v544_v55 }
 0x1e8   :  { %v548_v56 = vpop.permute.xlu1 %547 }
 0x1e9   :  { %550 = vst.msk [vmem:[#allocation4] sm:$0x3] %vm310_vm0, %v548_v56 }
 0x244   :  { %v521_v58 = vpop.xlane.xlu0 %520 }
 0x245   :  { %v522_v59 = vmul.f32 0.5, %v521_v58 }
 0x247   :  { %v523_v60 = vadd.f32 %v522_v59, %v492_v57 }
 0x249   :  { %525 = vst.msk [vmem:[#allocation5] sm:$0x3] %vm310_vm0, %v523_v60 }
 0x250   :  { %v554_v61 = vld [vmem:[#allocation5] sm:$0x3] }
 0x251   :  { %557 = vperm.xlu0 %636, %v554_v61  }
 0x2d0   :  { %v558_v62 = vpop.permute.xlu0 %557 }
 0x2d1   :  { %560 = vst [vmem:[%s813_s3] sm:$0x3] %v558_v62 }

</bundles_post_ra>
